<compile_context>
chip_gen: v5e
topology: v5e:2x2
jax: 0.10.0
libtpu: 0.0.40
codegen_flags: <defaults>
</compile_context>

<pallas_src>
import jax
import jax.numpy as jnp
from jax.experimental import pallas as pl
from jax.experimental.pallas import tpu as pltpu


def autoencoder_kernel(x_ref,
                       w1_ref, b1_ref,
                       w23_ref, b23_ref,
                       w4_ref, b4_ref,
                       out_ref):
    # MXU operands in bf16, accumulation + elementwise in f32.
    x = x_ref[...].astype(jnp.bfloat16)

    # encoder first layer: Linear(input_dim, 64) -> ReLU
    h1 = jnp.dot(x, w1_ref[...], preferred_element_type=jnp.float32) + b1_ref[...]
    h1 = jnp.maximum(h1, 0.0)

    # fused (encoder Linear(64,32) @ decoder Linear(32,64)) -> ReLU
    h2 = jnp.dot(h1.astype(jnp.bfloat16), w23_ref[...],
                 preferred_element_type=jnp.float32) + b23_ref[...]
    h2 = jnp.maximum(h2, 0.0)

    # decoder last layer: Linear(64, input_dim)
    dec = jnp.dot(h2.astype(jnp.bfloat16), w4_ref[...],
                  preferred_element_type=jnp.float32) + b4_ref[...]

    out_ref[...] = dec.astype(out_ref.dtype)


def _round_up(n, m):
    return ((n + m - 1) // m) * m


def autoencoder_forward(x, params, *, tile_b=None):
    """x: (B, input_dim) float32. params: (in,out) weights and (1,out) biases."""
    B, input_dim = x.shape

    w1, b1 = params["w1"], params["b1"]
    w2, b2 = params["w2"], params["b2"]
    w3, b3 = params["w3"], params["b3"]
    w4, b4 = params["w4"], params["b4"]

    # --- algebraic fusion of the two activation-free linears (w2, w3) -------
    w23 = jnp.dot(w2, w3, preferred_element_type=jnp.float32)           # (64, 64)
    b23 = jnp.dot(b2, w3, preferred_element_type=jnp.float32) + b3      # (1, 64)

    # Pre-cast matmul weights to bf16 once (kernel accumulates in f32).
    w1_mx = w1.astype(jnp.bfloat16)
    w23_mx = w23.astype(jnp.bfloat16)
    w4_mx = w4.astype(jnp.bfloat16)

    # --- tile selection (no host-side padding / slicing) --------------------
    if tile_b is None:
        if B <= 1024:
            # One block covering the whole batch: block_shape == full array dim
            # (no (8,128) constraint, no masking), minimal fixed overhead.
            tile_b = B
        else:
            # >= 8 grid steps (>= 4 per v7x TensorCore once the 'parallel' axis
            # is sharded), sublane-aligned, capped at 2048 rows (~1 MiB/blk).
            tile_b = min(2048, max(256, _round_up(pl.cdiv(B, 8), 8)))
    grid = (pl.cdiv(B, tile_b),)

    # Weights/biases: constant index map -> VMEM-resident, no re-DMA after the
    # first grid step (total footprint ~40 KiB in bf16).
    def rep(arr):
        return pl.BlockSpec(arr.shape, lambda i: (0, 0))

    flops_per_row = 2 * (input_dim * 64 + 64 * 64 + 64 * input_dim)
    weight_bytes = sum(int(a.size) * a.dtype.itemsize
                       for a in (w1_mx, b1, w23_mx, b23, w4_mx, b4))
    cost = pl.CostEstimate(
        flops=int(B * flops_per_row),
        transcendentals=0,
        bytes_accessed=int(2 * B * input_dim * x.dtype.itemsize + weight_bytes),
    )

    out = pl.pallas_call(
        autoencoder_kernel,
        out_shape=jax.ShapeDtypeStruct((B, input_dim), x.dtype),
        grid_spec=pltpu.PrefetchScalarGridSpec(
            num_scalar_prefetch=0,
            grid=grid,
            in_specs=[
                pl.BlockSpec((tile_b, input_dim), lambda i: (i, 0)),   # x
                rep(w1_mx), rep(b1),
                rep(w23_mx), rep(b23),
                rep(w4_mx), rep(b4),
            ],
            out_specs=pl.BlockSpec((tile_b, input_dim), lambda i: (i, 0)),
        ),
        compiler_params=pltpu.CompilerParams(
            dimension_semantics=("parallel",)),
        cost_estimate=cost,
    )(x, w1_mx, b1, w23_mx, b23, w4_mx, b4)

    return out


def init_params(key, input_dim):
    """Deterministic init mimicking nn.Linear's uniform(-1/sqrt(fan_in), ...).
    Weights stored transposed: (in_features, out_features)."""
    dims = [(input_dim, 64), (64, 32), (32, 64), (64, input_dim)]
    params = {}
    keys = jax.random.split(key, 2 * len(dims))
    for idx, (fan_in, fan_out) in enumerate(dims):
        bound = 1.0 / jnp.sqrt(float(fan_in))
        w = jax.random.uniform(keys[2 * idx], (fan_in, fan_out),
                               minval=-bound, maxval=bound, dtype=jnp.float32)
        b = jax.random.uniform(keys[2 * idx + 1], (1, fan_out),
                               minval=-bound, maxval=bound, dtype=jnp.float32)
        params[f"w{idx + 1}"] = w
        params[f"b{idx + 1}"] = b
    return params


def reference_forward(x, params):
    # Unfused f32 reference (matches the original PyTorch module semantics).
    h = jnp.maximum(x @ params["w1"] + params["b1"], 0.0)
    enc = h @ params["w2"] + params["b2"]
    h2 = jnp.maximum(enc @ params["w3"] + params["b3"], 0.0)
    return h2 @ params["w4"] + params["b4"]


if __name__ == "__main__":
    key = jax.random.PRNGKey(0)
    k_x, k_p = jax.random.split(key)

    batch = 64           # small test shape -> single full-batch block, grid=(1,)
    input_dim = 128
    x = jax.random.normal(k_x, (batch, input_dim), dtype=jnp.float32)
    params = init_params(k_p, input_dim)

    out = jax.block_until_ready(autoencoder_forward(x, params))
    ref = reference_forward(x, params)

    assert out.shape == (batch, input_dim)
    assert out.dtype == x.dtype
    # bf16 MXU operands (f32 accumulation) + exact W2@W3 fusion introduce small
    # rounding differences vs the pure-f32 reference.
    max_err = float(jnp.max(jnp.abs(out - ref)))
    assert jnp.allclose(out, ref, atol=5e-2, rtol=5e-2), \
        f"Pallas output mismatch vs reference (max|err|={max_err})"

    print("KERNEL_OK")
</pallas_src>

<mosaic_0001>
module attributes {stable_mosaic.version = 11 : i64} {
  func.func @autoencoder_kernel(%arg0: i32, %arg1: memref<64x128xf32, #tpu.memory_space<vmem>>, %arg2: memref<128x64xbf16, #tpu.memory_space<vmem>>, %arg3: memref<1x64xf32, #tpu.memory_space<vmem>>, %arg4: memref<64x64xbf16, #tpu.memory_space<vmem>>, %arg5: memref<1x64xf32, #tpu.memory_space<vmem>>, %arg6: memref<64x128xbf16, #tpu.memory_space<vmem>>, %arg7: memref<1x128xf32, #tpu.memory_space<vmem>>, %arg8: memref<64x128xf32, #tpu.memory_space<vmem>>) attributes {dimension_semantics = [#tpu.dimension_semantics<parallel>], iteration_bounds = array<i64: 1>, scalar_prefetch = 0 : i64, scratch_operands = 0 : i64, tpu.core_type = #tpu.core_type<tc>, window_params = [{transform_indices = @transform_0, window_bounds = array<i64: 64, 128>}, {pipeline_mode = #tpu.pipeline_mode<synchronous>, transform_indices = @transform_1, window_bounds = array<i64: 128, 64>}, {pipeline_mode = #tpu.pipeline_mode<synchronous>, transform_indices = @transform_2, window_bounds = array<i64: 1, 64>}, {pipeline_mode = #tpu.pipeline_mode<synchronous>, transform_indices = @transform_3, window_bounds = array<i64: 64, 64>}, {pipeline_mode = #tpu.pipeline_mode<synchronous>, transform_indices = @transform_4, window_bounds = array<i64: 1, 64>}, {pipeline_mode = #tpu.pipeline_mode<synchronous>, transform_indices = @transform_5, window_bounds = array<i64: 64, 128>}, {pipeline_mode = #tpu.pipeline_mode<synchronous>, transform_indices = @transform_6, window_bounds = array<i64: 1, 128>}, {transform_indices = @transform_7, window_bounds = array<i64: 64, 128>}]} {
    %c0 = arith.constant 0 : index
    %c0_0 = arith.constant 0 : index
    %0 = vector.load %arg1[%c0, %c0_0] : memref<64x128xf32, #tpu.memory_space<vmem>>, vector<64x128xf32>
    %1 = arith.truncf %0 : vector<64x128xf32> to vector<64x128xbf16>
    %c0_1 = arith.constant 0 : index
    %c0_2 = arith.constant 0 : index
    %2 = vector.load %arg2[%c0_1, %c0_2] : memref<128x64xbf16, #tpu.memory_space<vmem>>, vector<128x64xbf16>
    %cst = arith.constant dense<0.000000e+00> : vector<64x64xf32>
    %3 = tpu.matmul %1, %2, %cst {dimension_numbers = #tpu.dot_dimension_numbers<[1], [0], [0], [1], [0, 0, 1, 1], [], []>} : vector<64x128xbf16>, vector<128x64xbf16>, vector<64x64xf32> -> vector<64x64xf32>
    %c0_3 = arith.constant 0 : index
    %c0_4 = arith.constant 0 : index
    %4 = vector.load %arg3[%c0_3, %c0_4] : memref<1x64xf32, #tpu.memory_space<vmem>>, vector<1x64xf32>
    %5 = vector.broadcast %4 : vector<1x64xf32> to vector<64x64xf32>
    %6 = arith.addf %3, %5 : vector<64x64xf32>
    %cst_5 = arith.constant 0.000000e+00 : f32
    %7 = vector.broadcast %cst_5 : f32 to vector<64x64xf32>
    %8 = arith.maximumf %6, %7 : vector<64x64xf32>
    %9 = arith.truncf %8 : vector<64x64xf32> to vector<64x64xbf16>
    %c0_6 = arith.constant 0 : index
    %c0_7 = arith.constant 0 : index
    %10 = vector.load %arg4[%c0_6, %c0_7] : memref<64x64xbf16, #tpu.memory_space<vmem>>, vector<64x64xbf16>
    %cst_8 = arith.constant dense<0.000000e+00> : vector<64x64xf32>
    %11 = tpu.matmul %9, %10, %cst_8 {dimension_numbers = #tpu.dot_dimension_numbers<[1], [0], [0], [1], [0, 0, 1, 1], [], []>} : vector<64x64xbf16>, vector<64x64xbf16>, vector<64x64xf32> -> vector<64x64xf32>
    %c0_9 = arith.constant 0 : index
    %c0_10 = arith.constant 0 : index
    %12 = vector.load %arg5[%c0_9, %c0_10] : memref<1x64xf32, #tpu.memory_space<vmem>>, vector<1x64xf32>
    %13 = vector.broadcast %12 : vector<1x64xf32> to vector<64x64xf32>
    %14 = arith.addf %11, %13 : vector<64x64xf32>
    %cst_11 = arith.constant 0.000000e+00 : f32
    %15 = vector.broadcast %cst_11 : f32 to vector<64x64xf32>
    %16 = arith.maximumf %14, %15 : vector<64x64xf32>
    %17 = arith.truncf %16 : vector<64x64xf32> to vector<64x64xbf16>
    %c0_12 = arith.constant 0 : index
    %c0_13 = arith.constant 0 : index
    %18 = vector.load %arg6[%c0_12, %c0_13] : memref<64x128xbf16, #tpu.memory_space<vmem>>, vector<64x128xbf16>
    %cst_14 = arith.constant dense<0.000000e+00> : vector<64x128xf32>
    %19 = tpu.matmul %17, %18, %cst_14 {dimension_numbers = #tpu.dot_dimension_numbers<[1], [0], [0], [1], [0, 0, 1, 1], [], []>} : vector<64x64xbf16>, vector<64x128xbf16>, vector<64x128xf32> -> vector<64x128xf32>
    %c0_15 = arith.constant 0 : index
    %c0_16 = arith.constant 0 : index
    %20 = vector.load %arg7[%c0_15, %c0_16] : memref<1x128xf32, #tpu.memory_space<vmem>>, vector<1x128xf32>
    %21 = vector.broadcast %20 : vector<1x128xf32> to vector<64x128xf32>
    %22 = arith.addf %19, %21 : vector<64x128xf32>
    %c0_17 = arith.constant 0 : index
    %c0_18 = arith.constant 0 : index
    %23 = vector.load %arg8[%c0_17, %c0_18] : memref<64x128xf32, #tpu.memory_space<vmem>>, vector<64x128xf32>
    tpu.vector_store %arg8[%c0_17, %c0_18], %22 {strides = array<i32>} : memref<64x128xf32, #tpu.memory_space<vmem>>, vector<64x128xf32>,
    return
  }
  func.func @transform_0(%arg0: i32) -> (i32, i32) {
    %c0_i32 = arith.constant 0 : i32
    %c0_i32_0 = arith.constant 0 : i32
    return %arg0, %c0_i32 : i32, i32
  }
  func.func @transform_1(%arg0: i32) -> (i32, i32) {
    %c0_i32 = arith.constant 0 : i32
    %c0_i32_0 = arith.constant 0 : i32
    %c0_i32_1 = arith.constant 0 : i32
    return %c0_i32, %c0_i32_0 : i32, i32
  }
  func.func @transform_2(%arg0: i32) -> (i32, i32) {
    %c0_i32 = arith.constant 0 : i32
    %c0_i32_0 = arith.constant 0 : i32
    %c0_i32_1 = arith.constant 0 : i32
    return %c0_i32, %c0_i32_0 : i32, i32
  }
  func.func @transform_3(%arg0: i32) -> (i32, i32) {
    %c0_i32 = arith.constant 0 : i32
    %c0_i32_0 = arith.constant 0 : i32
    %c0_i32_1 = arith.constant 0 : i32
    return %c0_i32, %c0_i32_0 : i32, i32
  }
  func.func @transform_4(%arg0: i32) -> (i32, i32) {
    %c0_i32 = arith.constant 0 : i32
    %c0_i32_0 = arith.constant 0 : i32
    %c0_i32_1 = arith.constant 0 : i32
    return %c0_i32, %c0_i32_0 : i32, i32
  }
  func.func @transform_5(%arg0: i32) -> (i32, i32) {
    %c0_i32 = arith.constant 0 : i32
    %c0_i32_0 = arith.constant 0 : i32
    %c0_i32_1 = arith.constant 0 : i32
    return %c0_i32, %c0_i32_0 : i32, i32
  }
  func.func @transform_6(%arg0: i32) -> (i32, i32) {
    %c0_i32 = arith.constant 0 : i32
    %c0_i32_0 = arith.constant 0 : i32
    %c0_i32_1 = arith.constant 0 : i32
    return %c0_i32, %c0_i32_0 : i32, i32
  }
  func.func @transform_7(%arg0: i32) -> (i32, i32) {
    %c0_i32 = arith.constant 0 : i32
    %c0_i32_0 = arith.constant 0 : i32
    return %arg0, %c0_i32 : i32, i32
  }
}

</mosaic_0001>

<bundles_post_ra>
// kernel: tpu_custom_call.1
= control target key start
LH: loop header
LB: loop body
LE: loop exit
PB: predicated region body
PF: predicated region fallthrough
CT: control target
= control target key end

     0   :  { %12 = vsyncpa [#allocation3], 0  ;;  %s645_s0 = inlined_call_operand.vmem [shape: f32[64,128], index: 0, kind: input, shape index: {}]   ;;  %s646_s1 = inlined_call_operand.vmem [shape: bf16[128,64], index: 1, kind: input, shape index: {}]   ;;  %s647_s2 = inlined_call_operand.vmem [shape: f32[1,64], index: 2, kind: input, shape index: {}]   ;;  %s648_s3 = inlined_call_operand.vmem [shape: bf16[64,64], index: 3, kind: input, shape index: {}]   ;;  %s649_s4 = inlined_call_operand.vmem [shape: f32[1,64], index: 4, kind: input, shape index: {}]   ;;  %s650_s5 = inlined_call_operand.hbm [shape: bf16[64,128], index: 5, kind: input, shape index: {}]   ;;  %s651_s6 = inlined_call_operand.vmem [shape: f32[1,128], index: 6, kind: input, shape index: {}]   ;;  %s652_s7 = inlined_call_operand.hbm [shape: f32[64,128], index: 7, kind: output, shape index: {}]  }
   0x1   :  { %13 = vsyncpa [#allocation4], 0  ;;  %s28_s26 = sshll.u32 %s650_s5, 4  ;;  %s516_s27 = smov [#allocation2]   ;;  %s29_s26 = int_to_ptr.hbm [resolvable:$true] %s28_s26 }
   0x2   :  { %s30_s28 = sshll.u32 %s516_s27, 4  ;;  %s517_s29 = smov 64   ;;  %s31_s28 = int_to_ptr.vmem [resolvable:$true] %s30_s28 }
   0x3   :  { %s518_s30 = smov 4  }
   0x4   :  { %36 = dma.hbm_to_vmem [thread:$0]  %s29_s26, 512, %s31_s28, [#allocation3], %s517_s29, %s517_s29, %s518_s30  }
   0x5   :  { %512 = dma.done.wait [#allocation3], 512  }
   0x6   :  { %513 = vsyncadd [#allocation3], 4294966784  ;;  %v438_v0 = vld [vmem:[%s646_s1 + $0x38] sm:$0xff]  ;;  %v437_v1 = vld [vmem:[%s646_s1 + $0x30] sm:$0xff]  ;;  %vm201_vm0 = vcmask 523264   ;;  %s346_s27 = sshll.u32 %s652_s7, 4  ;;  %s347_s27 = int_to_ptr.hbm [resolvable:$true] %s346_s27 }
   0x7   :  { %124 = vmatpush.bf16.msra.mxu0 %v438_v0  ;;  %447 = vmatpush.bf16.msra.mxu3 %v438_v0  ;;  %v436_v2 = vld [vmem:[%s646_s1 + $0x28] sm:$0xff]  ;;  %v435_v3 = vld [vmem:[%s646_s1 + $0x20] sm:$0xff]  ;;  %v434_v4 = vld [vmem:[%s646_s1 + $0x18] sm:$0xff]  ;;  %s520_s28 = smov 128   ;;  %s521_s29 = smov 8  }
   0x8   :  { %v433_v5 = vld [vmem:[%s646_s1 + $0x10] sm:$0xff]  ;;  %v432_v6 = vld [vmem:[%s646_s1 + $0x8] sm:$0xff]  ;;  %v431_v7 = vld [vmem:[%s646_s1] sm:$0xff] }
   0x9   :  { %v44_v8 = vld [vmem:[%s645_s0] sm:$0xff]  ;;  %v45_v9 = vld [vmem:[%s645_s0 + $0x8] sm:$0xff]  ;;  %v46_v10 = vld [vmem:[%s645_s0 + $0x10] sm:$0xff] }
   0xa   :  { %v47_v11 = vld [vmem:[%s645_s0 + $0x18] sm:$0xff]  ;;  %v52_v12 = vpack.c.bf16 %v45_v9, %v44_v8  ;;  %v48_v14 = vld [vmem:[%s645_s0 + $0x20] sm:$0xff]  ;;  %v49_v15 = vld [vmem:[%s645_s0 + $0x28] sm:$0xff] }
   0xb   :  { %125 = vmatpush.bf16.msra.mxu0 %v437_v1  ;;  %448 = vmatpush.bf16.msra.mxu3 %v437_v1  ;;  %v53_v13 = vpack.c.bf16 %v47_v11, %v46_v10  ;;  %v54_v16 = vpack.c.bf16 %v49_v15, %v48_v14  ;;  %v50_v17 = vld [vmem:[%s645_s0 + $0x30] sm:$0xff]  ;;  %v51_v18 = vld [vmem:[%s645_s0 + $0x38] sm:$0xff]  ;;  %v440_v22 = vld [vmem:[%s648_s3 + $0x8] sm:$0xff] }
   0xc   :  { %v55_v19 = vpack.c.bf16 %v51_v18, %v50_v17  ;;  %v442_v20 = vld [vmem:[%s648_s3 + $0x18] sm:$0xff]  ;;  %v441_v21 = vld [vmem:[%s648_s3 + $0x10] sm:$0xff]  ;;  %v439_v23 = vld [vmem:[%s648_s3] sm:$0xff] }
   0xd   :  { %218 = vmatpush.bf16.msra.mxu1 %v442_v20  ;;  %v461_v25 = vld [vmem:[%s647_s2] ss:$0 sm:$0xff]  ;;  %v446_v53 = vld [vmem:[#allocation2 + $0x18] sm:$0xff]  ;;  %v445_v54 = vld [vmem:[#allocation2 + $0x10] sm:$0xff] }
   0xe   :  { %307 = vmatpush.bf16.msra.mxu2 %v446_v53  ;;  %v444_v55 = vld [vmem:[#allocation2 + $0x8] sm:$0xff]  ;;  %v443_v56 = vld [vmem:[#allocation2] sm:$0xff] }
   0xf   :  { %126 = vmatpush.bf16.msra.mxu0 %v436_v2  ;;  %449 = vmatpush.bf16.msra.mxu3 %v436_v2  ;;  %v462_v58 = vld [vmem:[%s649_s4] ss:$0 sm:$0xff] }
  0x11   :  { %219 = vmatpush.bf16.msra.mxu1 %v441_v21 }
  0x12   :  { %308 = vmatpush.bf16.msra.mxu2 %v445_v54 }
  0x13   :  { %127 = vmatpush.bf16.msra.mxu0 %v435_v3  ;;  %450 = vmatpush.bf16.msra.mxu3 %v435_v3 }
  0x15   :  { %220 = vmatpush.bf16.msra.mxu1 %v440_v22  ;;  %v463_v22 = vld [vmem:[%s651_s6] ss:$0 sm:$0xff]  ;;  %s519_s6 = smov [#allocation5]  }
  0x16   :  { %309 = vmatpush.bf16.msra.mxu2 %v444_v55  ;;  %s344_s24 = sshll.u32 %s519_s6, 4  ;;  %s345_s24 = int_to_ptr.vmem [resolvable:$true] %s344_s24 }
  0x17   :  { %128 = vmatpush.bf16.msra.mxu0 %v434_v4  ;;  %451 = vmatpush.bf16.msra.mxu3 %v434_v4 }
  0x19   :  { %221 = vmatpush.bf16.msra.mxu1 %v439_v23 }
  0x1a   :  { %310 = vmatpush.bf16.msra.mxu2 %v443_v56 }
  0x1b   :  { %129 = vmatpush.bf16.msra.mxu0 %v433_v5  ;;  %452 = vmatpush.bf16.msra.mxu3 %v433_v5 }
  0x1f   :  { %130 = vmatpush.bf16.msra.mxu0 %v432_v6  ;;  %453 = vmatpush.bf16.msra.mxu3 %v432_v6 }
  0x23   :  { %131 = vmatpush.bf16.msra.mxu0 %v431_v7  ;;  %454 = vmatpush.bf16.msra.mxu3 %v431_v7 }
  0x26   :  { %132 = vmatmul.bf16.vlgmr.msra.gmra.mxu0 %v52_v12  ;;  %137 = vmatmul.bf16.vlgmr.msra.gmra.mxu3 %v53_v13 }
  0x36   :  { %142 = vmatmul.bf16.gmra.mxu3 %v54_v16 }
  0x46   :  { %147 = vmatmul.bf16.gmra.mxu3 %v55_v19 }
  0xa3   :  { %v133_v24 = vpop.f32.mrf.mxu0 }
  0xa4   :  { %v134_v27 = vadd.f32 %v461_v25, %v133_v24 }
  0xa6   :  { %v153_v30 = vmax.f32 %v134_v27, 0.0 }
  0xa9   :  { %v138_v26 = vpop.f32.mrf.mxu3 }
  0xaa   :  { %v139_v34 = vadd.f32 %v461_v25, %v138_v26 }
  0xab   :  { %v135_v28 = vpop.f32.mrf.mxu0 }
  0xac   :  { %v136_v29 = vadd.f32 %v461_v25, %v135_v28  ;;  %v155_v37 = vmax.f32 %v139_v34, 0.0 }
  0xae   :  { %v154_v31 = vmax.f32 %v136_v29, 0.0 }
  0xb0   :  { %v161_v32 = vpack.c.bf16 %v154_v31, %v153_v30 }
  0xb1   :  { %v140_v33 = vpop.f32.mrf.mxu3 }
  0xb2   :  { %407 = vmatmul.msk.bf16.vlgmr.msra.gmra.mxu1 %vm201_vm0, %v161_v32  ;;  %v141_v35 = vadd.f32 %v461_v25, %v140_v33 }
  0xb4   :  { %v156_v38 = vmax.f32 %v141_v35, 0.0 }
  0xb6   :  { %v162_v39 = vpack.c.bf16 %v156_v38, %v155_v37 }
  0xb9   :  { %v143_v36 = vpop.f32.mrf.mxu3 }
  0xba   :  { %v144_v41 = vadd.f32 %v461_v25, %v143_v36 }
  0xbc   :  { %v157_v44 = vmax.f32 %v144_v41, 0.0 }
  0xc1   :  { %v145_v40 = vpop.f32.mrf.mxu3 }
  0xc2   :  { %408 = vmatmul.msk.bf16.gmra.mxu1 %vm201_vm0, %v162_v39  ;;  %v146_v42 = vadd.f32 %v461_v25, %v145_v40 }
  0xc4   :  { %v158_v45 = vmax.f32 %v146_v42, 0.0 }
  0xc6   :  { %v163_v46 = vpack.c.bf16 %v158_v45, %v157_v44 }
  0xc9   :  { %v148_v43 = vpop.f32.mrf.mxu3 }
  0xca   :  { %v149_v48 = vadd.f32 %v461_v25, %v148_v43 }
  0xcc   :  { %v159_v50 = vmax.f32 %v149_v48, 0.0 }
  0xd1   :  { %v150_v47 = vpop.f32.mrf.mxu3 }
  0xd2   :  { %409 = vmatmul.msk.bf16.gmra.mxu1 %vm201_vm0, %v163_v46  ;;  %v151_v49 = vadd.f32 %v461_v25, %v150_v47 }
  0xd4   :  { %v160_v51 = vmax.f32 %v151_v49, 0.0 }
  0xd6   :  { %v164_v52 = vpack.c.bf16 %v160_v51, %v159_v50 }
  0xe2   :  { %410 = vmatmul.msk.bf16.gmra.mxu1 %vm201_vm0, %v164_v52 }
 0x12f   :  { %v223_v57 = vpop.f32.mrf.mxu1 }
 0x130   :  { %v224_v59 = vadd.f32 %v462_v58, %v223_v57 }
 0x132   :  { %v243_v62 = vmax.f32 %v224_v59, 0.0 }
 0x137   :  { %v225_v60 = vpop.f32.mrf.mxu1 }
 0x138   :  { %v226_v61 = vadd.f32 %v462_v58, %v225_v60 }
 0x13a   :  { %v244_v63 = vmax.f32 %v226_v61, 0.0 }
 0x13c   :  { %v251_v0 = vpack.c.bf16 %v244_v63, %v243_v62 }
 0x13e   :  { %427 = vmatmul.msk.bf16.vlgmr.msra.gmra.mxu2 %vm201_vm0, %v251_v0 }
 0x13f   :  { %v228_v1 = vpop.f32.mrf.mxu1 }
 0x140   :  { %v229_v2 = vadd.f32 %v462_v58, %v228_v1 }
 0x142   :  { %v245_v5 = vmax.f32 %v229_v2, 0.0 }
 0x147   :  { %v230_v3 = vpop.f32.mrf.mxu1 }
 0x148   :  { %v231_v4 = vadd.f32 %v462_v58, %v230_v3 }
 0x14a   :  { %v246_v6 = vmax.f32 %v231_v4, 0.0 }
 0x14c   :  { %v252_v7 = vpack.c.bf16 %v246_v6, %v245_v5 }
 0x14e   :  { %428 = vmatmul.msk.bf16.gmra.mxu2 %vm201_vm0, %v252_v7 }
 0x14f   :  { %v233_v8 = vpop.f32.mrf.mxu1 }
 0x150   :  { %v234_v9 = vadd.f32 %v462_v58, %v233_v8 }
 0x152   :  { %v247_v12 = vmax.f32 %v234_v9, 0.0 }
 0x157   :  { %v235_v10 = vpop.f32.mrf.mxu1 }
 0x158   :  { %v236_v11 = vadd.f32 %v462_v58, %v235_v10 }
 0x15a   :  { %v248_v13 = vmax.f32 %v236_v11, 0.0 }
 0x15c   :  { %v253_v14 = vpack.c.bf16 %v248_v13, %v247_v12 }
 0x15e   :  { %429 = vmatmul.msk.bf16.gmra.mxu2 %vm201_vm0, %v253_v14 }
 0x15f   :  { %v238_v15 = vpop.f32.mrf.mxu1 }
 0x160   :  { %v239_v16 = vadd.f32 %v462_v58, %v238_v15 }
 0x162   :  { %v249_v19 = vmax.f32 %v239_v16, 0.0 }
 0x167   :  { %v240_v17 = vpop.f32.mrf.mxu1 }
 0x168   :  { %v241_v18 = vadd.f32 %v462_v58, %v240_v17 }
 0x16a   :  { %v250_v20 = vmax.f32 %v241_v18, 0.0 }
 0x16c   :  { %v254_v21 = vpack.c.bf16 %v250_v20, %v249_v19 }
 0x16e   :  { %430 = vmatmul.msk.bf16.gmra.mxu2 %vm201_vm0, %v254_v21 }
 0x1c1   :  { %v312_v23 = vpop.f32.mrf.mxu2 }
 0x1c2   :  { %v313_v24 = vadd.f32 %v463_v22, %v312_v23 }
 0x1c4   :  { %332 = vst [vmem:[#allocation5] sm:$0xff] %v313_v24 }
 0x1c9   :  { %v314_v25 = vpop.f32.mrf.mxu2 }
 0x1ca   :  { %v315_v26 = vadd.f32 %v463_v22, %v314_v25 }
 0x1cc   :  { %333 = vst [vmem:[#allocation5 + $0x8] sm:$0xff] %v315_v26 }
 0x1d1   :  { %v317_v27 = vpop.f32.mrf.mxu2 }
 0x1d2   :  { %v318_v28 = vadd.f32 %v463_v22, %v317_v27 }
 0x1d4   :  { %334 = vst [vmem:[#allocation5 + $0x10] sm:$0xff] %v318_v28 }
 0x1d9   :  { %v319_v29 = vpop.f32.mrf.mxu2 }
 0x1da   :  { %v320_v30 = vadd.f32 %v463_v22, %v319_v29 }
 0x1dc   :  { %335 = vst [vmem:[#allocation5 + $0x18] sm:$0xff] %v320_v30 }
 0x1e1   :  { %v322_v31 = vpop.f32.mrf.mxu2 }
 0x1e2   :  { %v323_v32 = vadd.f32 %v463_v22, %v322_v31 }
 0x1e4   :  { %336 = vst [vmem:[#allocation5 + $0x20] sm:$0xff] %v323_v32 }
 0x1e9   :  { %v324_v33 = vpop.f32.mrf.mxu2 }
 0x1ea   :  { %v325_v34 = vadd.f32 %v463_v22, %v324_v33 }
 0x1ec   :  { %337 = vst [vmem:[#allocation5 + $0x28] sm:$0xff] %v325_v34 }
 0x1f1   :  { %v327_v35 = vpop.f32.mrf.mxu2 }
 0x1f2   :  { %v328_v36 = vadd.f32 %v463_v22, %v327_v35 }
 0x1f4   :  { %338 = vst [vmem:[#allocation5 + $0x30] sm:$0xff] %v328_v36 }
 0x1f9   :  { %v329_v37 = vpop.f32.mrf.mxu2 }
 0x1fa   :  { %v330_v38 = vadd.f32 %v463_v22, %v329_v37 }
 0x1fc   :  { %339 = vst [vmem:[#allocation5 + $0x38] sm:$0xff] %v330_v38 }
 0x1fd   :  { %352 = dma.vmem_to_hbm [thread:$0]  %s345_s24, 1024, %s347_s27, [#allocation4], %s520_s28, %s520_s28, %s521_s29  }
 0x1fe   :  { %514 = dma.done.wait [#allocation4], 1024  }
 0x1ff   :  { %515 = vsyncadd [#allocation4], 4294966272 }
 0x200   :  { %357 = vsyncpa [#allocation3], 1 }
 0x201   :  { %358 = vsyncpa [#allocation4], 1 }

</bundles_post_ra>
